<compile_context>
chip_gen: v6e
topology: v6e:2x2x1
jax: 0.10.0
libtpu: 0.0.40
codegen_flags: <defaults>
</compile_context>

<pallas_src>
import functools

import jax
import jax.numpy as jnp
from jax.experimental import pallas as pl
from jax.experimental.pallas import tpu as pltpu

_LANE = 128     # lane width (last dim)
_SUBLANE = 8    # sublane width (second-to-last dim)


def _round_up(x: int, m: int) -> int:
    return (x + m - 1) // m * m


# ----------------------------- Pallas kernel ------------------------------ #

def _fused_mlp_kernel(*refs, activations):
    """Fused multi-layer Linear(+act) chain, entirely in VMEM/vregs.

    refs layout: (x_ref, w1_ref, b1_ref, w2_ref, b2_ref, ..., o_ref)
      x_ref:  (block_m, K0_pad)
      wi_ref: (Ki-1_pad, Ki_pad)  -- already transposed from torch's (out, in)
      bi_ref: (1, Ki_pad)
      o_ref:  (block_m, Kn_pad)
    """
    x_ref = refs[0]
    o_ref = refs[-1]
    wb_refs = refs[1:-1]

    y = x_ref[...].astype(jnp.float32)
    for li, act in enumerate(activations):
        w_ref = wb_refs[2 * li]
        b_ref = wb_refs[2 * li + 1]
        y = jnp.dot(y, w_ref[...], preferred_element_type=jnp.float32) + b_ref[...]
        if act == "relu":
            y = jnp.maximum(y, 0.0)
        elif act == "sigmoid":
            # exact sigmoid (exp on EUP); swap to pl.reciprocal(1+exp(-y), approx=True)
            # only if the VPU divide ever shows up in a profile.
            y = jax.nn.sigmoid(y)
    o_ref[...] = y.astype(o_ref.dtype)


def fused_mlp(x2d, padded_params, activations, out_dim_pad, *, max_block_m: int = 512):
    """Run the whole MLP in one pallas_call.

    x2d:           (M, K0_pad) float32, feature dim already lane-padded.
    padded_params: list of (w_t_pad (Kin_pad, Kout_pad), b_pad (1, Kout_pad)).
    activations:   list of "relu" / "sigmoid" / "none", one per layer.
    out_dim_pad:   lane-padded final output width.
    Returns:       (M, out_dim_pad) — caller slices the true output columns.
    """
    m, k_in_pad = x2d.shape

    # Row tiling: one block for small M, parallel 1-D grid for large M.
    block_m = min(max_block_m, _round_up(m, _SUBLANE))
    m_pad = _round_up(m, block_m)
    if m_pad != m:
        x2d = jnp.pad(x2d, ((0, m_pad - m), (0, 0)))
    grid = (m_pad // block_m,)

    in_specs = [pl.BlockSpec((block_m, k_in_pad), lambda i: (i, 0))]
    inputs = [x2d]
    for (w_t, b) in padded_params:
        # Weights / biases: whole array resident in VMEM for every grid step.
        in_specs.append(pl.BlockSpec(w_t.shape, lambda i: (0, 0)))
        in_specs.append(pl.BlockSpec(b.shape, lambda i: (0, 0)))
        inputs.append(w_t)
        inputs.append(b)

    kernel = functools.partial(_fused_mlp_kernel, activations=tuple(activations))
    out = pl.pallas_call(
        kernel,
        out_shape=jax.ShapeDtypeStruct((m_pad, out_dim_pad), x2d.dtype),
        grid=grid,
        in_specs=in_specs,
        out_specs=pl.BlockSpec((block_m, out_dim_pad), lambda i: (i, 0)),
        compiler_params=pltpu.CompilerParams(
            dimension_semantics=("parallel",),  # shard row tiles across TCs (v7x)
        ),
    )(*inputs)
    return out[:m]


# ------------------------------ MLP wrapper -------------------------------- #

class MLP:
    """JAX/Pallas port of the PyTorch MLP module (SAM BoxDecoder heads)."""

    def __init__(self, input_dim: int, hidden_dim: int, output_dim: int,
                 num_layers: int, sigmoid_output: bool = False, key=None):
        self.num_layers = num_layers
        self.sigmoid_output = sigmoid_output
        self.input_dim = input_dim
        self.output_dim = output_dim

        h = [hidden_dim] * (num_layers - 1)
        dims = list(zip([input_dim] + h, h + [output_dim]))

        if key is None:
            key = jax.random.PRNGKey(0)

        self.params = []    # unpadded torch-layout (out, in), (out,) — for reference
        self._padded = []   # pre-transposed + lane-padded (in_pad, out_pad), (1, out_pad)
        for (n_in, n_out) in dims:
            key, wk, bk = jax.random.split(key, 3)
            bound = 1.0 / float(n_in) ** 0.5
            w = jax.random.uniform(wk, (n_out, n_in), jnp.float32, -bound, bound)
            b = jax.random.uniform(bk, (n_out,), jnp.float32, -bound, bound)
            self.params.append((w, b))

            in_pad = _round_up(n_in, _LANE)
            out_pad = _round_up(n_out, _LANE)
            # Zero padding is essential: padded hidden lanes stay exactly 0 through
            # matmul+bias+relu, and padded output lanes are sliced off below.
            w_t_pad = jnp.zeros((in_pad, out_pad), jnp.float32).at[:n_in, :n_out].set(w.T)
            b_pad = jnp.zeros((1, out_pad), jnp.float32).at[0, :n_out].set(b)
            self._padded.append((w_t_pad, b_pad))

        self.activations = []
        for i in range(num_layers):
            if i < num_layers - 1:
                self.activations.append("relu")
            elif sigmoid_output:
                self.activations.append("sigmoid")
            else:
                self.activations.append("none")

        self._in_pad = _round_up(input_dim, _LANE)
        self._out_pad = _round_up(output_dim, _LANE)

    def __call__(self, x):
        # x: (..., input_dim) -> flatten leading dims to rows.
        lead = x.shape[:-1]
        x2 = x.reshape(-1, x.shape[-1])
        if x2.shape[-1] != self._in_pad:
            x2 = jnp.pad(x2, ((0, 0), (0, self._in_pad - x2.shape[-1])))
        y = fused_mlp(x2, self._padded, self.activations, self._out_pad)
        y = y[:, : self.output_dim]
        return y.reshape(*lead, self.output_dim)


# ------------------------------ reference ---------------------------------- #

def mlp_ref(x, params, num_layers, sigmoid_output):
    for i, (w, b) in enumerate(params):
        y = x @ w.T + b
        x = jnp.maximum(y, 0.0) if i < num_layers - 1 else y
    if sigmoid_output:
        x = jax.nn.sigmoid(x)
    return x


if __name__ == "__main__":
    key = jax.random.PRNGKey(0)
    kx, kp1, kp2 = jax.random.split(key, 3)

    batch, seq = 2, 8
    x = jax.random.normal(kx, (batch, seq, 32), jnp.float32)

    # box_prediction_head-style MLP (sigmoid output, tiny output dim).
    head = MLP(input_dim=32, hidden_dim=64, output_dim=4, num_layers=3,
               sigmoid_output=True, key=kp1)
    out1 = jax.block_until_ready(head(x))
    ref1 = mlp_ref(x, head.params, head.num_layers, sigmoid_output=True)
    assert out1.shape == (batch, seq, 4), out1.shape
    assert jnp.allclose(out1, ref1, atol=1e-5, rtol=1e-5), "head mismatch vs reference"

    # output_hypernetworks_mlps-style MLP (no sigmoid).
    hyper = MLP(input_dim=32, hidden_dim=32, output_dim=4, num_layers=3,
                sigmoid_output=False, key=kp2)
    out2 = jax.block_until_ready(hyper(x))
    ref2 = mlp_ref(x, hyper.params, hyper.num_layers, sigmoid_output=False)
    assert out2.shape == (batch, seq, 4), out2.shape
    assert jnp.allclose(out2, ref2, atol=1e-5, rtol=1e-5), "hyper mismatch vs reference"

    print("KERNEL_OK")
</pallas_src>

<mosaic_0001>
module attributes {stable_mosaic.version = 11 : i64} {
  func.func @_fused_mlp_kernel(%arg0: i32, %arg1: memref<16x128xf32, #tpu.memory_space<vmem>>, %arg2: memref<128x128xf32, #tpu.memory_space<vmem>>, %arg3: memref<1x128xf32, #tpu.memory_space<vmem>>, %arg4: memref<128x128xf32, #tpu.memory_space<vmem>>, %arg5: memref<1x128xf32, #tpu.memory_space<vmem>>, %arg6: memref<128x128xf32, #tpu.memory_space<vmem>>, %arg7: memref<1x128xf32, #tpu.memory_space<vmem>>, %arg8: memref<16x128xf32, #tpu.memory_space<vmem>>) attributes {dimension_semantics = [#tpu.dimension_semantics<parallel>], iteration_bounds = array<i64: 1>, scalar_prefetch = 0 : i64, scratch_operands = 0 : i64, tpu.core_type = #tpu.core_type<tc>, window_params = [{transform_indices = @transform_0, window_bounds = array<i64: 16, 128>}, {pipeline_mode = #tpu.pipeline_mode<synchronous>, transform_indices = @transform_1, window_bounds = array<i64: 128, 128>}, {pipeline_mode = #tpu.pipeline_mode<synchronous>, transform_indices = @transform_2, window_bounds = array<i64: 1, 128>}, {pipeline_mode = #tpu.pipeline_mode<synchronous>, transform_indices = @transform_3, window_bounds = array<i64: 128, 128>}, {pipeline_mode = #tpu.pipeline_mode<synchronous>, transform_indices = @transform_4, window_bounds = array<i64: 1, 128>}, {pipeline_mode = #tpu.pipeline_mode<synchronous>, transform_indices = @transform_5, window_bounds = array<i64: 128, 128>}, {pipeline_mode = #tpu.pipeline_mode<synchronous>, transform_indices = @transform_6, window_bounds = array<i64: 1, 128>}, {transform_indices = @transform_7, window_bounds = array<i64: 16, 128>}]} {
    %c0 = arith.constant 0 : index
    %c0_0 = arith.constant 0 : index
    %0 = vector.load %arg1[%c0, %c0_0] : memref<16x128xf32, #tpu.memory_space<vmem>>, vector<16x128xf32>
    %c0_1 = arith.constant 0 : index
    %c0_2 = arith.constant 0 : index
    %1 = vector.load %arg2[%c0_1, %c0_2] : memref<128x128xf32, #tpu.memory_space<vmem>>, vector<128x128xf32>
    %cst = arith.constant dense<0.000000e+00> : vector<16x128xf32>
    %2 = tpu.matmul %0, %1, %cst {dimension_numbers = #tpu.dot_dimension_numbers<[1], [0], [0], [1], [0, 0, 1, 1], [], []>} : vector<16x128xf32>, vector<128x128xf32>, vector<16x128xf32> -> vector<16x128xf32>
    %c0_3 = arith.constant 0 : index
    %c0_4 = arith.constant 0 : index
    %3 = vector.load %arg3[%c0_3, %c0_4] : memref<1x128xf32, #tpu.memory_space<vmem>>, vector<1x128xf32>
    %4 = vector.broadcast %3 : vector<1x128xf32> to vector<16x128xf32>
    %5 = arith.addf %2, %4 : vector<16x128xf32>
    %cst_5 = arith.constant 0.000000e+00 : f32
    %6 = vector.broadcast %cst_5 : f32 to vector<16x128xf32>
    %7 = arith.maximumf %5, %6 : vector<16x128xf32>
    %c0_6 = arith.constant 0 : index
    %c0_7 = arith.constant 0 : index
    %8 = vector.load %arg4[%c0_6, %c0_7] : memref<128x128xf32, #tpu.memory_space<vmem>>, vector<128x128xf32>
    %cst_8 = arith.constant dense<0.000000e+00> : vector<16x128xf32>
    %9 = tpu.matmul %7, %8, %cst_8 {dimension_numbers = #tpu.dot_dimension_numbers<[1], [0], [0], [1], [0, 0, 1, 1], [], []>} : vector<16x128xf32>, vector<128x128xf32>, vector<16x128xf32> -> vector<16x128xf32>
    %c0_9 = arith.constant 0 : index
    %c0_10 = arith.constant 0 : index
    %10 = vector.load %arg5[%c0_9, %c0_10] : memref<1x128xf32, #tpu.memory_space<vmem>>, vector<1x128xf32>
    %11 = vector.broadcast %10 : vector<1x128xf32> to vector<16x128xf32>
    %12 = arith.addf %9, %11 : vector<16x128xf32>
    %cst_11 = arith.constant 0.000000e+00 : f32
    %13 = vector.broadcast %cst_11 : f32 to vector<16x128xf32>
    %14 = arith.maximumf %12, %13 : vector<16x128xf32>
    %c0_12 = arith.constant 0 : index
    %c0_13 = arith.constant 0 : index
    %15 = vector.load %arg6[%c0_12, %c0_13] : memref<128x128xf32, #tpu.memory_space<vmem>>, vector<128x128xf32>
    %cst_14 = arith.constant dense<0.000000e+00> : vector<16x128xf32>
    %16 = tpu.matmul %14, %15, %cst_14 {dimension_numbers = #tpu.dot_dimension_numbers<[1], [0], [0], [1], [0, 0, 1, 1], [], []>} : vector<16x128xf32>, vector<128x128xf32>, vector<16x128xf32> -> vector<16x128xf32>
    %c0_15 = arith.constant 0 : index
    %c0_16 = arith.constant 0 : index
    %17 = vector.load %arg7[%c0_15, %c0_16] : memref<1x128xf32, #tpu.memory_space<vmem>>, vector<1x128xf32>
    %18 = vector.broadcast %17 : vector<1x128xf32> to vector<16x128xf32>
    %19 = arith.addf %16, %18 : vector<16x128xf32>
    %20 = arith.negf %19 : vector<16x128xf32>
    %21 = math.exp %20 : vector<16x128xf32>
    %cst_17 = arith.constant 1.000000e+00 : f32
    %22 = vector.broadcast %cst_17 : f32 to vector<16x128xf32>
    %23 = arith.addf %22, %21 : vector<16x128xf32>
    %24 = arith.divf %22, %23 : vector<16x128xf32>
    %c0_18 = arith.constant 0 : index
    %c0_19 = arith.constant 0 : index
    %25 = vector.load %arg8[%c0_18, %c0_19] : memref<16x128xf32, #tpu.memory_space<vmem>>, vector<16x128xf32>
    tpu.vector_store %arg8[%c0_18, %c0_19], %24 {strides = array<i32>} : memref<16x128xf32, #tpu.memory_space<vmem>>, vector<16x128xf32>,
    return
  }
  func.func @transform_0(%arg0: i32) -> (i32, i32) {
    %c0_i32 = arith.constant 0 : i32
    %c0_i32_0 = arith.constant 0 : i32
    return %arg0, %c0_i32 : i32, i32
  }
  func.func @transform_1(%arg0: i32) -> (i32, i32) {
    %c0_i32 = arith.constant 0 : i32
    %c0_i32_0 = arith.constant 0 : i32
    %c0_i32_1 = arith.constant 0 : i32
    return %c0_i32, %c0_i32_0 : i32, i32
  }
  func.func @transform_2(%arg0: i32) -> (i32, i32) {
    %c0_i32 = arith.constant 0 : i32
    %c0_i32_0 = arith.constant 0 : i32
    %c0_i32_1 = arith.constant 0 : i32
    return %c0_i32, %c0_i32_0 : i32, i32
  }
  func.func @transform_3(%arg0: i32) -> (i32, i32) {
    %c0_i32 = arith.constant 0 : i32
    %c0_i32_0 = arith.constant 0 : i32
    %c0_i32_1 = arith.constant 0 : i32
    return %c0_i32, %c0_i32_0 : i32, i32
  }
  func.func @transform_4(%arg0: i32) -> (i32, i32) {
    %c0_i32 = arith.constant 0 : i32
    %c0_i32_0 = arith.constant 0 : i32
    %c0_i32_1 = arith.constant 0 : i32
    return %c0_i32, %c0_i32_0 : i32, i32
  }
  func.func @transform_5(%arg0: i32) -> (i32, i32) {
    %c0_i32 = arith.constant 0 : i32
    %c0_i32_0 = arith.constant 0 : i32
    %c0_i32_1 = arith.constant 0 : i32
    return %c0_i32, %c0_i32_0 : i32, i32
  }
  func.func @transform_6(%arg0: i32) -> (i32, i32) {
    %c0_i32 = arith.constant 0 : i32
    %c0_i32_0 = arith.constant 0 : i32
    %c0_i32_1 = arith.constant 0 : i32
    return %c0_i32, %c0_i32_0 : i32, i32
  }
  func.func @transform_7(%arg0: i32) -> (i32, i32) {
    %c0_i32 = arith.constant 0 : i32
    %c0_i32_0 = arith.constant 0 : i32
    return %arg0, %c0_i32 : i32, i32
  }
}

</mosaic_0001>

<bundles_post_ra>
// kernel: tpu_custom_call.1
= control target key start
LH: loop header
LB: loop body
LE: loop exit
PB: predicated region body
PF: predicated region fallthrough
CT: control target
= control target key end

     0   :  { %12 = vsyncpa [#allocation3], 0  ;;  %s788_s0 = inlined_call_operand.hbm [shape: f32[16,128], index: 0, kind: input, shape index: {}]   ;;  %s789_s1 = inlined_call_operand.hbm [shape: f32[128,128], index: 1, kind: input, shape index: {}]   ;;  %s790_s2 = inlined_call_operand.vmem [shape: f32[1,128], index: 2, kind: input, shape index: {}]   ;;  %s791_s3 = inlined_call_operand.hbm [shape: f32[128,128], index: 3, kind: input, shape index: {}]   ;;  %s792_s4 = inlined_call_operand.vmem [shape: f32[1,128], index: 4, kind: input, shape index: {}]   ;;  %s793_s5 = inlined_call_operand.hbm [shape: f32[128,128], index: 5, kind: input, shape index: {}]   ;;  %s794_s6 = inlined_call_operand.vmem [shape: f32[1,128], index: 6, kind: input, shape index: {}]   ;;  %s795_s7 = inlined_call_operand.hbm [shape: f32[16,128], index: 7, kind: output, shape index: {}]  }
   0x1   :  { %13 = vsyncpa [#allocation6], 0 }
   0x2   :  { %14 = vsyncpa [#allocation9], 0 }
   0x3   :  { %15 = vsyncpa [#allocation4], 0  ;;  %s702_s24 = smov [#allocation5]   ;;  %s703_s26 = smov [#allocation2]  }
   0x4   :  { %s33_s25 = sshll.u32 %s702_s24, 4  ;;  %s21_s27 = sshll.u32 %s703_s26, 4  ;;  %s34_s25 = int_to_ptr.vmem [resolvable:$true] %s33_s25  ;;  %s22_s27 = int_to_ptr.vmem [resolvable:$true] %s21_s27 }
   0x5   :  { %s602_s28 = scalar_lea.vmem %s34_s25, 2048  ;;  %p607_p1 = scmp.lt.s32.totalorder %s34_s25, %s34_s25 }
   0x6   :  { %p603_p0 = scmp.ne.s32.totalorder %s34_s25, %s602_s28  ;;  %p608_p2 = scmp.lt.s32.totalorder %s602_s28, %s602_s28 }
   0x8   :  { %p609_p3 = por %p608_p2, %p607_p1 }
   0xa   :  { %p610_p4 = pnand %p609_p3, %p603_p0 }
   0xc   :  { %613 = shalt.err (!%p610_p4)
}
   0xd   :  { %s704_s29 = smov 128   ;;  %s705_s30 = smov 8  }
   0xe   :  { %39 = dma.hbm_to_vmem [thread:$0]  %s789_s1, 2048, %s34_s25, [#allocation6], %s704_s29, %s704_s29, %s705_s30  }
   0xf   :  { %s622_s10 = scalar_lea.vmem %s22_s27, 256  ;;  %p627_p6 = scmp.lt.s32.totalorder %s22_s27, %s22_s27 }
  0x10   :  { %p623_p5 = scmp.ne.s32.totalorder %s22_s27, %s622_s10  ;;  %p628_p7 = scmp.lt.s32.totalorder %s622_s10, %s622_s10 }
  0x12   :  { %p629_p8 = por %p628_p7, %p627_p6 }
  0x14   :  { %p630_p9 = pnand %p629_p8, %p623_p5 }
  0x16   :  { %633 = shalt.err (!%p630_p9)
}
  0x17   :  { %27 = dma.hbm_to_vmem [thread:$0]  %s788_s0, 256, %s22_s27, [#allocation3], %s704_s29, %s704_s29, %s705_s30  }
  0x18   :  { %s706_s13 = smov [#allocation7]   ;;  %s707_s15 = smov [#allocation8]  }
  0x19   :  { %s47_s14 = sshll.u32 %s706_s13, 4  ;;  %s61_s16 = sshll.u32 %s707_s15, 4  ;;  %s48_s14 = int_to_ptr.vmem [resolvable:$true] %s47_s14  ;;  %s62_s16 = int_to_ptr.vmem [resolvable:$true] %s61_s16 }
  0x1a   :  { %s642_s1 = scalar_lea.vmem %s48_s14, 2048  ;;  %p647_p11 = scmp.lt.s32.totalorder %s48_s14, %s48_s14 }
  0x1b   :  { %p643_p10 = scmp.ne.s32.totalorder %s48_s14, %s642_s1  ;;  %p648_p12 = scmp.lt.s32.totalorder %s642_s1, %s642_s1 }
  0x1d   :  { %p649_p13 = por %p648_p12, %p647_p11 }
  0x1f   :  { %p650_p0 = pnand %p649_p13, %p643_p10 }
  0x21   :  { %653 = shalt.err (!%p650_p0)
}
  0x22   :  { %53 = dma.hbm_to_vmem [thread:$0]  %s791_s3, 2048, %s48_s14, [#allocation6], %s704_s29, %s704_s29, %s705_s30  }
  0x23   :  { %s662_s0 = scalar_lea.vmem %s62_s16, 2048  ;;  %p667_p2 = scmp.lt.s32.totalorder %s62_s16, %s62_s16 }
  0x24   :  { %p663_p1 = scmp.ne.s32.totalorder %s62_s16, %s662_s0  ;;  %p668_p3 = scmp.lt.s32.totalorder %s662_s0, %s662_s0 }
  0x26   :  { %p669_p4 = por %p668_p3, %p667_p2 }
  0x28   :  { %p670_p5 = pnand %p669_p4, %p663_p1 }
  0x2a   :  { %673 = shalt.err (!%p670_p5)
}
  0x2b   :  { %67 = dma.hbm_to_vmem [thread:$0]  %s793_s5, 2048, %s62_s16, [#allocation9], %s704_s29, %s704_s29, %s705_s30  }
  0x2c   :  { %694 = dma.done.wait [#allocation3], 256  }
  0x2d   :  { %695 = vsyncadd [#allocation3], 4294967040 }
  0x2e   :  { %696 = dma.done.wait [#allocation6], 4096  }
  0x2f   :  { %697 = vsyncadd [#allocation6], 4294963200 }
  0x30   :  { %698 = dma.done.wait [#allocation9], 2048  }
  0x31   :  { %699 = vsyncadd [#allocation9], 4294965248  ;;  %v99_v0 = vld [vmem:[#allocation5 + $0x78] sm:$0xff]  ;;  %v98_v1 = vld [vmem:[#allocation5 + $0x70] sm:$0xff] }
  0x32   :  { %474 = vmatprep.subr.mxu0 %v99_v0  ;;  %v97_v2 = vld [vmem:[#allocation5 + $0x68] sm:$0xff]  ;;  %v96_v3 = vld [vmem:[#allocation5 + $0x60] sm:$0xff]  ;;  %v82_v4 = vld [vmem:[#allocation2] sm:$0xff] }
  0x33   :  { %475 = vmatpush3.msra.mxu0 %v99_v0  ;;  %v95_v5 = vld [vmem:[#allocation5 + $0x58] sm:$0xff]  ;;  %506 = vmatprep.mubr.f32.mxu0 %v82_v4  ;;  %v198_v7 = vld [vmem:[#allocation7 + $0x70] sm:$0xff]  ;;  %v197_v9 = vld [vmem:[#allocation7 + $0x68] sm:$0xff] }
  0x34   :  { %476 = vmatprep.subr.mxu0 %v98_v1  ;;  %v199_v6 = vld [vmem:[#allocation7 + $0x78] sm:$0xff]  ;;  %v94_v8 = vld [vmem:[#allocation5 + $0x50] sm:$0xff]  ;;  %v93_v10 = vld [vmem:[#allocation5 + $0x48] sm:$0xff] }
  0x35   :  { %477 = vmatpush3.msra.mxu0 %v98_v1  ;;  %509 = vmatprep.subr.mxu1 %v199_v6  ;;  %v196_v11 = vld [vmem:[#allocation7 + $0x60] sm:$0xff]  ;;  %v195_v13 = vld [vmem:[#allocation7 + $0x58] sm:$0xff]  ;;  %v194_v15 = vld [vmem:[#allocation7 + $0x50] sm:$0xff] }
  0x36   :  { %478 = vmatprep.subr.mxu0 %v97_v2  ;;  %510 = vmatpush3.msra.mxu1 %v199_v6  ;;  %v92_v12 = vld [vmem:[#allocation5 + $0x40] sm:$0xff]  ;;  %v91_v14 = vld [vmem:[#allocation5 + $0x38] sm:$0xff]  ;;  %v90_v16 = vld [vmem:[#allocation5 + $0x30] sm:$0xff] }
  0x37   :  { %479 = vmatpush3.msra.mxu0 %v97_v2  ;;  %511 = vmatprep.subr.mxu1 %v198_v7  ;;  %v193_v17 = vld [vmem:[#allocation7 + $0x48] sm:$0xff]  ;;  %v192_v19 = vld [vmem:[#allocation7 + $0x40] sm:$0xff]  ;;  %v191_v21 = vld [vmem:[#allocation7 + $0x38] sm:$0xff] }
  0x38   :  { %480 = vmatprep.subr.mxu0 %v96_v3  ;;  %512 = vmatpush3.msra.mxu1 %v198_v7  ;;  %v89_v18 = vld [vmem:[#allocation5 + $0x28] sm:$0xff]  ;;  %v88_v20 = vld [vmem:[#allocation5 + $0x20] sm:$0xff]  ;;  %v87_v22 = vld [vmem:[#allocation5 + $0x18] sm:$0xff] }
  0x39   :  { %481 = vmatpush3.msra.mxu0 %v96_v3  ;;  %513 = vmatprep.subr.mxu1 %v197_v9  ;;  %v190_v23 = vld [vmem:[#allocation7 + $0x30] sm:$0xff]  ;;  %v189_v25 = vld [vmem:[#allocation7 + $0x28] sm:$0xff]  ;;  %v188_v27 = vld [vmem:[#allocation7 + $0x20] sm:$0xff] }
  0x3a   :  { %482 = vmatprep.subr.mxu0 %v95_v5  ;;  %514 = vmatpush3.msra.mxu1 %v197_v9  ;;  %v86_v24 = vld [vmem:[#allocation5 + $0x10] sm:$0xff]  ;;  %v85_v26 = vld [vmem:[#allocation5 + $0x8] sm:$0xff]  ;;  %v84_v28 = vld [vmem:[#allocation5] sm:$0xff] }
  0x3b   :  { %483 = vmatpush3.msra.mxu0 %v95_v5  ;;  %515 = vmatprep.subr.mxu1 %v196_v11  ;;  %v83_v29 = vld [vmem:[#allocation2 + $0x8] sm:$0xff]  ;;  %v186_v31 = vld [vmem:[#allocation7 + $0x10] sm:$0xff]  ;;  %v185_v32 = vld [vmem:[#allocation7 + $0x8] sm:$0xff] }
  0x3c   :  { %484 = vmatprep.subr.mxu0 %v94_v8  ;;  %516 = vmatpush3.msra.mxu1 %v196_v11  ;;  %v187_v30 = vld [vmem:[#allocation7 + $0x18] sm:$0xff]  ;;  %v184_v33 = vld [vmem:[#allocation7] sm:$0xff]  ;;  %v298_v35 = vld [vmem:[#allocation8 + $0x70] sm:$0xff] }
  0x3d   :  { %485 = vmatpush3.msra.mxu0 %v94_v8  ;;  %517 = vmatprep.subr.mxu1 %v195_v13  ;;  %v299_v34 = vld [vmem:[#allocation8 + $0x78] sm:$0xff]  ;;  %v297_v36 = vld [vmem:[#allocation8 + $0x68] sm:$0xff]  ;;  %v296_v37 = vld [vmem:[#allocation8 + $0x60] sm:$0xff] }
  0x3e   :  { %486 = vmatprep.subr.mxu0 %v93_v10  ;;  %518 = vmatpush3.msra.mxu1 %v195_v13  ;;  %v295_v38 = vld [vmem:[#allocation8 + $0x58] sm:$0xff]  ;;  %v294_v39 = vld [vmem:[#allocation8 + $0x50] sm:$0xff]  ;;  %v293_v40 = vld [vmem:[#allocation8 + $0x48] sm:$0xff] }
  0x3f   :  { %487 = vmatpush3.msra.mxu0 %v93_v10  ;;  %519 = vmatprep.subr.mxu1 %v194_v15  ;;  %v292_v41 = vld [vmem:[#allocation8 + $0x40] sm:$0xff]  ;;  %v291_v42 = vld [vmem:[#allocation8 + $0x38] sm:$0xff]  ;;  %v290_v43 = vld [vmem:[#allocation8 + $0x30] sm:$0xff] }
  0x40   :  { %488 = vmatprep.subr.mxu0 %v92_v12  ;;  %520 = vmatpush3.msra.mxu1 %v194_v15  ;;  %v289_v44 = vld [vmem:[#allocation8 + $0x28] sm:$0xff]  ;;  %v288_v45 = vld [vmem:[#allocation8 + $0x20] sm:$0xff]  ;;  %v415_v46 = vld [vmem:[%s790_s2] ss:$0 sm:$0xff] }
  0x41   :  { %489 = vmatpush3.msra.mxu0 %v92_v12  ;;  %521 = vmatprep.subr.mxu1 %v193_v17  ;;  %v287_v53 = vld [vmem:[#allocation8 + $0x18] sm:$0xff]  ;;  %v286_v54 = vld [vmem:[#allocation8 + $0x10] sm:$0xff]  ;;  %v285_v55 = vld [vmem:[#allocation8 + $0x8] sm:$0xff] }
  0x42   :  { %490 = vmatprep.subr.mxu0 %v91_v14  ;;  %522 = vmatpush3.msra.mxu1 %v193_v17  ;;  %v284_v56 = vld [vmem:[#allocation8] sm:$0xff]  ;;  %v416_v57 = vld [vmem:[%s792_s4] ss:$0 sm:$0xff]  ;;  %s708_s4 = smov [#allocation10]  }
  0x43   :  { %491 = vmatpush3.msra.mxu0 %v91_v14  ;;  %523 = vmatprep.subr.mxu1 %v192_v19  ;;  %v417_v0 = vld [vmem:[%s794_s6] ss:$0 sm:$0xff]  ;;  %s401_s24 = sshll.u32 %s708_s4, 4  ;;  %s402_s24 = int_to_ptr.vmem [resolvable:$true] %s401_s24 }
  0x44   :  { %492 = vmatprep.subr.mxu0 %v90_v16  ;;  %524 = vmatpush3.msra.mxu1 %v192_v19  ;;  %s674_s6 = scalar_lea.vmem %s402_s24, 256  ;;  %p679_p7 = scmp.lt.s32.totalorder %s402_s24, %s402_s24 }
  0x45   :  { %493 = vmatpush3.msra.mxu0 %v90_v16  ;;  %525 = vmatprep.subr.mxu1 %v191_v21  ;;  %p675_p6 = scmp.ne.s32.totalorder %s402_s24, %s674_s6  ;;  %p680_p8 = scmp.lt.s32.totalorder %s674_s6, %s674_s6 }
  0x46   :  { %494 = vmatprep.subr.mxu0 %v89_v18  ;;  %526 = vmatpush3.msra.mxu1 %v191_v21 }
  0x47   :  { %495 = vmatpush3.msra.mxu0 %v89_v18  ;;  %527 = vmatprep.subr.mxu1 %v190_v23  ;;  %p681_p9 = por %p680_p8, %p679_p7 }
  0x48   :  { %496 = vmatprep.subr.mxu0 %v88_v20  ;;  %528 = vmatpush3.msra.mxu1 %v190_v23 }
  0x49   :  { %497 = vmatpush3.msra.mxu0 %v88_v20  ;;  %529 = vmatprep.subr.mxu1 %v189_v25  ;;  %p682_p10 = pnand %p681_p9, %p675_p6 }
  0x4a   :  { %498 = vmatprep.subr.mxu0 %v87_v22  ;;  %530 = vmatpush3.msra.mxu1 %v189_v25 }
  0x4b   :  { %499 = vmatpush3.msra.mxu0 %v87_v22  ;;  %531 = vmatprep.subr.mxu1 %v188_v27 }
  0x4c   :  { %500 = vmatprep.subr.mxu0 %v86_v24  ;;  %532 = vmatpush3.msra.mxu1 %v188_v27 }
  0x4d   :  { %501 = vmatpush3.msra.mxu0 %v86_v24  ;;  %533 = vmatprep.subr.mxu1 %v187_v30 }
  0x4e   :  { %502 = vmatprep.subr.mxu0 %v85_v26  ;;  %534 = vmatpush3.msra.mxu1 %v187_v30 }
  0x4f   :  { %503 = vmatpush3.msra.mxu0 %v85_v26  ;;  %535 = vmatprep.subr.mxu1 %v186_v31 }
  0x50   :  { %504 = vmatprep.subr.mxu0 %v84_v28  ;;  %536 = vmatpush3.msra.mxu1 %v186_v31 }
  0x51   :  { %505 = vmatpush3.msra.mxu0 %v84_v28  ;;  %537 = vmatprep.subr.mxu1 %v185_v32 }
  0x52   :  { %507 = vmatmul.mubr.f32.vlgmr.msra.gmra.mxu0 %v83_v29  ;;  %538 = vmatpush3.msra.mxu1 %v185_v32 }
  0x53   :  { %539 = vmatprep.subr.mxu1 %v184_v33  ;;  %544 = vmatprep.subr.mxu0 %v299_v34 }
  0x54   :  { %540 = vmatpush3.msra.mxu1 %v184_v33  ;;  %545 = vmatpush3.msra.mxu0 %v299_v34 }
  0x55   :  { %546 = vmatprep.subr.mxu0 %v298_v35 }
  0x56   :  { %547 = vmatpush3.msra.mxu0 %v298_v35 }
  0x57   :  { %548 = vmatprep.subr.mxu0 %v297_v36 }
  0x58   :  { %549 = vmatpush3.msra.mxu0 %v297_v36 }
  0x59   :  { %550 = vmatprep.subr.mxu0 %v296_v37 }
  0x5a   :  { %551 = vmatpush3.msra.mxu0 %v296_v37 }
  0x5b   :  { %552 = vmatprep.subr.mxu0 %v295_v38 }
  0x5c   :  { %553 = vmatpush3.msra.mxu0 %v295_v38 }
  0x5d   :  { %554 = vmatprep.subr.mxu0 %v294_v39 }
  0x5e   :  { %555 = vmatpush3.msra.mxu0 %v294_v39 }
  0x5f   :  { %556 = vmatprep.subr.mxu0 %v293_v40 }
  0x60   :  { %557 = vmatpush3.msra.mxu0 %v293_v40 }
  0x61   :  { %558 = vmatprep.subr.mxu0 %v292_v41 }
  0x62   :  { %559 = vmatpush3.msra.mxu0 %v292_v41 }
  0x63   :  { %560 = vmatprep.subr.mxu0 %v291_v42 }
  0x64   :  { %561 = vmatpush3.msra.mxu0 %v291_v42 }
  0x65   :  { %562 = vmatprep.subr.mxu0 %v290_v43 }
  0x66   :  { %563 = vmatpush3.msra.mxu0 %v290_v43 }
  0x67   :  { %564 = vmatprep.subr.mxu0 %v289_v44 }
  0x68   :  { %565 = vmatpush3.msra.mxu0 %v289_v44 }
  0x69   :  { %566 = vmatprep.subr.mxu0 %v288_v45 }
  0x6a   :  { %567 = vmatpush3.msra.mxu0 %v288_v45 }
  0x6b   :  { %568 = vmatprep.subr.mxu0 %v287_v53 }
  0x6c   :  { %569 = vmatpush3.msra.mxu0 %v287_v53 }
  0x6d   :  { %570 = vmatprep.subr.mxu0 %v286_v54 }
  0x6e   :  { %571 = vmatpush3.msra.mxu0 %v286_v54 }
  0x6f   :  { %572 = vmatprep.subr.mxu0 %v285_v55 }
  0x70   :  { %573 = vmatpush3.msra.mxu0 %v285_v55 }
  0x71   :  { %574 = vmatprep.subr.mxu0 %v284_v56 }
  0x72   :  { %575 = vmatpush3.msra.mxu0 %v284_v56 }
 0x112   :  { %v508_v47 = vpop.f32.mrf.mxu0 }
 0x113   :  { %v179_v48 = vadd.f32 %v508_v47, %v415_v46 }
 0x114   :  { %v173_v49 = vpop.f32.mrf.mxu0 }
 0x115   :  { %v174_v50 = vadd.f32 %v415_v46, %v173_v49  ;;  %v183_v52 = vmax.f32 %v179_v48, 0.0 }
 0x117   :  { %v182_v51 = vmax.f32 %v174_v50, 0.0 }
 0x119   :  { %541 = vmatprep.mubr.f32.mxu1 %v182_v51 }
 0x11a   :  { %542 = vmatmul.mubr.f32.vlgmr.msra.gmra.mxu1 %v183_v52 }
 0x1da   :  { %v543_v58 = vpop.f32.mrf.mxu1 }
 0x1db   :  { %v279_v59 = vadd.f32 %v543_v58, %v416_v57 }
 0x1dc   :  { %v273_v60 = vpop.f32.mrf.mxu1 }
 0x1dd   :  { %v274_v61 = vadd.f32 %v416_v57, %v273_v60  ;;  %v283_v63 = vmax.f32 %v279_v59, 0.0 }
 0x1df   :  { %v282_v62 = vmax.f32 %v274_v61, 0.0 }
 0x1e1   :  { %576 = vmatprep.mubr.f32.mxu0 %v282_v62 }
 0x1e2   :  { %577 = vmatmul.mubr.f32.vlgmr.msra.gmra.mxu0 %v283_v63 }
 0x2a2   :  { %v578_v1 = vpop.f32.mrf.mxu0 }
 0x2a3   :  { %v379_v2 = vadd.f32 %v578_v1, %v417_v0 }
 0x2a4   :  { %v373_v3 = vpop.f32.mrf.mxu0 }
 0x2a5   :  { %v419_v4 = vmul.f32 -1.442695, %v379_v2  ;;  %v374_v5 = vadd.f32 %v417_v0, %v373_v3 }
 0x2a7   :  { %586 = vpow2.f32 %v419_v4  ;;  %v418_v6 = vmul.f32 -1.442695, %v374_v5 }
 0x2a9   :  { %588 = vpow2.f32 %v418_v6 }
 0x2b4   :  { %v587_v7 = vpop.eup %586 }
 0x2b5   :  { %v389_v8 = vadd.f32 1.0, %v587_v7 }
 0x2b6   :  { %v589_v9 = vpop.eup %588 }
 0x2b7   :  { %590 = vrcp.f32 %v389_v8  ;;  %v388_v10 = vadd.f32 1.0, %v589_v9 }
 0x2b9   :  { %592 = vrcp.f32 %v388_v10 }
 0x2c4   :  { %v591_v11 = vpop.eup %590 }
 0x2c5   :  { %395 = vst [vmem:[#allocation10 + $0x8] sm:$0xff] %v591_v11 }
 0x2c6   :  { %v593_v12 = vpop.eup %592 }
 0x2c7   :  { %394 = vst [vmem:[#allocation10] sm:$0xff] %v593_v12 }
 0x2c8   :  { %685 = shalt.err (!%p682_p10)
}
 0x2c9   :  { %407 = dma.vmem_to_hbm [thread:$0]  %s402_s24, 256, %s795_s7, [#allocation4], %s704_s29, %s704_s29, %s705_s30  }
 0x2ca   :  { %700 = dma.done.wait [#allocation4], 256  }
 0x2cb   :  { %701 = vsyncadd [#allocation4], 4294967040 }
 0x2cc   :  { %411 = vsyncpa [#allocation3], 1 }
 0x2cd   :  { %412 = vsyncpa [#allocation6], 1 }
 0x2ce   :  { %413 = vsyncpa [#allocation9], 1 }
 0x2cf   :  { %414 = vsyncpa [#allocation4], 1 }

</bundles_post_ra>
